<compile_context>
chip_gen: v7x
topology: tpu7x:2x2x1
jax: 0.10.0
libtpu: 0.0.40
codegen_flags: <defaults>
</compile_context>

<pallas_src>
import functools

import jax
import jax.numpy as jnp
from jax.experimental import pallas as pl
from jax.experimental.pallas import tpu as pltpu


def _hloss_kernel(x_ref, o_ref, acc_ref, *, tn, n_cols, needs_mask):
    """One grid step processes a (1, C, tn) tile: softmax over C (sublanes),
    spatial columns on lanes. Per-column entropy terms are accumulated into a
    lane-shaped (1, tn) accumulator; the final scalar reduce happens once."""
    b = pl.program_id(0)
    j = pl.program_id(1)
    nb = pl.num_programs(0)
    nj = pl.num_programs(1)

    @pl.when(jnp.logical_and(b == 0, j == 0))
    def _init():
        acc_ref[...] = jnp.zeros_like(acc_ref)

    x = x_ref[...].astype(jnp.float32)              # (1, C, tn)
    m = jnp.max(x, axis=1, keepdims=True)           # (1, 1, tn)
    z = x - m
    e = jnp.exp(z)
    s = jnp.sum(e, axis=1, keepdims=True)           # (1, 1, tn)
    ez = jnp.sum(e * z, axis=1, keepdims=True)      # (1, 1, tn)
    # per column: sum_c p_c * log(p_c) = (sum_c e_c * z_c) / s - log(s)
    t = (ez / s - jnp.log(s))[0]                    # (1, tn)

    if needs_mask:
        # Padding columns only ever appear in the last column tile.
        @pl.when(j < nj - 1)
        def _steady():
            acc_ref[...] += t

        @pl.when(j == nj - 1)
        def _tail():
            col_ids = j * tn + jax.lax.broadcasted_iota(jnp.int32, (1, tn), 1)
            acc_ref[...] += jnp.where(col_ids < n_cols, t, 0.0)
    else:
        acc_ref[...] += t

    @pl.when(jnp.logical_and(b == nb - 1, j == nj - 1))
    def _finalize():
        o_ref[...] = (jnp.zeros_like(o_ref)
                      + jnp.sum(acc_ref[...])).astype(o_ref.dtype)


def hloss(x, *, tn=None):
    """Pallas TPU implementation of HLoss.forward for NCHW input x."""
    B, C, H, W = x.shape
    N = H * W
    itemsize = jnp.dtype(x.dtype).itemsize

    if tn is None:
        # ~2 MiB of input per grid step: big enough to sit near HBM roofline,
        # small enough (with 2x double-buffering + accumulator + f32 temps)
        # to fit comfortably in v7x's scoped VMEM as well as v5e/v6e.
        target_bytes = 2 * 1024 * 1024
        tn = (target_bytes // max(1, C * itemsize)) // 128 * 128
        tn = max(128, min(tn, 65536))
    tn = min(tn, pl.cdiv(N, 128) * 128)      # don't exceed the (128-padded) N
    tn = max(128, (tn // 128) * 128)

    padded = pl.cdiv(N, tn) * tn
    xr = x.reshape(B, C, N)                  # free reshape, no transpose
    if padded != N:
        # Zero-padded columns are masked out inside the kernel (last tile only).
        xr = jnp.pad(xr, ((0, 0), (0, 0), (0, padded - N)))
    needs_mask = padded != N
    nj = padded // tn

    kernel = functools.partial(
        _hloss_kernel, tn=tn, n_cols=N, needs_mask=needs_mask)

    cost = pl.CostEstimate(
        flops=int(6 * B * C * N),
        transcendentals=int(B * N * (C + 1)),   # exp per element + log per col
        bytes_accessed=int(B * C * N * itemsize) + 4,
    )

    out = pl.pallas_call(
        kernel,
        out_shape=jax.ShapeDtypeStruct((1, 1), jnp.float32),
        grid_spec=pltpu.PrefetchScalarGridSpec(
            num_scalar_prefetch=0,
            grid=(B, nj),
            in_specs=[pl.BlockSpec((1, C, tn), lambda b, j: (b, 0, j))],
            out_specs=pl.BlockSpec((1, 1), lambda b, j: (0, 0)),
            scratch_shapes=[pltpu.VMEM((1, tn), jnp.float32)],
        ),
        compiler_params=pltpu.CompilerParams(
            dimension_semantics=("arbitrary", "arbitrary")),
        cost_estimate=cost,
    )(xr)
    return out[0, 0].astype(x.dtype)


if __name__ == "__main__":
    key = jax.random.PRNGKey(0)
    x = jax.random.normal(key, (2, 4, 16, 16), dtype=jnp.float32)

    result = jax.block_until_ready(hloss(x))

    # Pure-JAX reference (matches the PyTorch forward semantics).
    ref = jnp.sum(jax.nn.softmax(x, axis=1) * jax.nn.log_softmax(x, axis=1))
    assert jnp.allclose(result, ref, atol=1e-3, rtol=1e-4), (result, ref)

    print("KERNEL_OK")
</pallas_src>

<mosaic_0001>
module attributes {stable_mosaic.version = 11 : i64} {
  func.func @_hloss_kernel(%arg0: i32, %arg1: i32, %arg2: memref<1x4x256xf32, #tpu.memory_space<vmem>>, %arg3: memref<1x1xf32, #tpu.memory_space<vmem>>, %arg4: memref<1x256xf32, #tpu.memory_space<vmem>>) attributes {dimension_semantics = [#tpu.dimension_semantics<arbitrary>, #tpu.dimension_semantics<arbitrary>], iteration_bounds = array<i64: 2, 1>, scalar_prefetch = 0 : i64, scratch_operands = 1 : i64, tpu.core_type = #tpu.core_type<tc>, window_params = [{transform_indices = @transform_0, window_bounds = array<i64: 1, 4, 256>}, {pipeline_mode = #tpu.pipeline_mode<synchronous>, transform_indices = @transform_1, window_bounds = array<i64: 1, 1>}]} {
    %c0_i32 = arith.constant 0 : i32
    %0 = arith.cmpi eq, %arg0, %c0_i32 : i32
    %c0_i32_0 = arith.constant 0 : i32
    %1 = arith.cmpi eq, %arg1, %c0_i32_0 : i32
    %2 = arith.andi %0, %1 : i1
    %3 = arith.extui %2 : i1 to i32
    %c0_i32_1 = arith.constant 0 : i32
    %4 = arith.cmpi ne, %3, %c0_i32_1 : i32
    scf.if %4 {
      %cst_12 = arith.constant 0.000000e+00 : f32
      %28 = vector.broadcast %cst_12 : f32 to vector<1x256xf32>
      %c0_13 = arith.constant 0 : index
      %c0_14 = arith.constant 0 : index
      %29 = vector.load %arg4[%c0_13, %c0_14] : memref<1x256xf32, #tpu.memory_space<vmem>>, vector<1x256xf32>
      tpu.vector_store %arg4[%c0_13, %c0_14], %28 {strides = array<i32>} : memref<1x256xf32, #tpu.memory_space<vmem>>, vector<1x256xf32>,
    } else {
    }
    %c0 = arith.constant 0 : index
    %c0_2 = arith.constant 0 : index
    %c0_3 = arith.constant 0 : index
    %5 = vector.load %arg2[%c0, %c0_2, %c0_3] : memref<1x4x256xf32, #tpu.memory_space<vmem>>, vector<1x4x256xf32>
    %cst = arith.constant dense<0xFF800000> : vector<1x256xf32>
    %6 = vector.multi_reduction <maximumf>, %5, %cst [1] : vector<1x4x256xf32> to vector<1x256xf32>
    %7 = vector.shape_cast %6 : vector<1x256xf32> to vector<1x1x256xf32>
    %8 = vector.broadcast %7 : vector<1x1x256xf32> to vector<1x4x256xf32>
    %9 = arith.subf %5, %8 : vector<1x4x256xf32>
    %10 = math.exp %9 : vector<1x4x256xf32>
    %cst_4 = arith.constant dense<0.000000e+00> : vector<1x256xf32>
    %11 = vector.multi_reduction <add>, %10, %cst_4 [1] : vector<1x4x256xf32> to vector<1x256xf32>
    %12 = vector.shape_cast %11 : vector<1x256xf32> to vector<1x1x256xf32>
    %13 = arith.mulf %10, %9 : vector<1x4x256xf32>
    %cst_5 = arith.constant dense<0.000000e+00> : vector<1x256xf32>
    %14 = vector.multi_reduction <add>, %13, %cst_5 [1] : vector<1x4x256xf32> to vector<1x256xf32>
    %15 = vector.shape_cast %14 : vector<1x256xf32> to vector<1x1x256xf32>
    %16 = arith.divf %15, %12 : vector<1x1x256xf32>
    %17 = math.log %12 : vector<1x1x256xf32>
    %18 = arith.subf %16, %17 : vector<1x1x256xf32>
    %19 = vector.shape_cast %18 : vector<1x1x256xf32> to vector<1x256xf32>
    %c0_6 = arith.constant 0 : index
    %c0_7 = arith.constant 0 : index
    %20 = vector.load %arg4[%c0_6, %c0_7] : memref<1x256xf32, #tpu.memory_space<vmem>>, vector<1x256xf32>
    %21 = arith.addf %20, %19 : vector<1x256xf32>
    %c0_8 = arith.constant 0 : index
    %c0_9 = arith.constant 0 : index
    %22 = vector.load %arg4[%c0_8, %c0_9] : memref<1x256xf32, #tpu.memory_space<vmem>>, vector<1x256xf32>
    tpu.vector_store %arg4[%c0_8, %c0_9], %21 {strides = array<i32>} : memref<1x256xf32, #tpu.memory_space<vmem>>, vector<1x256xf32>,
    %c1_i32 = arith.constant 1 : i32
    %23 = arith.cmpi eq, %arg0, %c1_i32 : i32
    %c0_i32_10 = arith.constant 0 : i32
    %24 = arith.cmpi eq, %arg1, %c0_i32_10 : i32
    %25 = arith.andi %23, %24 : i1
    %26 = arith.extui %25 : i1 to i32
    %c0_i32_11 = arith.constant 0 : i32
    %27 = arith.cmpi ne, %26, %c0_i32_11 : i32
    scf.if %27 {
      %cst_12 = arith.constant 0.000000e+00 : f32
      %28 = vector.broadcast %cst_12 : f32 to vector<1x1xf32>
      %c0_13 = arith.constant 0 : index
      %c0_14 = arith.constant 0 : index
      %29 = vector.load %arg4[%c0_13, %c0_14] : memref<1x256xf32, #tpu.memory_space<vmem>>, vector<1x256xf32>
      %30 = vector.shape_cast %29 : vector<1x256xf32> to vector<1x1x256xf32>
      %cst_15 = arith.constant dense<0.000000e+00> : vector<1xf32>
      %31 = vector.multi_reduction <add>, %30, %cst_15 [1, 2] : vector<1x1x256xf32> to vector<1xf32>
      %32 = vector.shape_cast %31 : vector<1xf32> to vector<1x1x1xf32>
      %33 = vector.extract %32[0, 0, 0] : f32 from vector<1x1x1xf32>
      %34 = vector.broadcast %33 : f32 to vector<1x1xf32>
      %35 = arith.addf %28, %34 : vector<1x1xf32>
      %c0_16 = arith.constant 0 : index
      %c0_17 = arith.constant 0 : index
      %36 = vector.load %arg3[%c0_16, %c0_17] : memref<1x1xf32, #tpu.memory_space<vmem>>, vector<1x1xf32>
      tpu.vector_store %arg3[%c0_16, %c0_17], %35 {strides = array<i32>} : memref<1x1xf32, #tpu.memory_space<vmem>>, vector<1x1xf32>,
    } else {
    }
    return
  }
  func.func @transform_0(%arg0: i32, %arg1: i32) -> (i32, i32, i32) {
    %c0_i32 = arith.constant 0 : i32
    %c0_i32_0 = arith.constant 0 : i32
    return %arg0, %c0_i32, %arg1 : i32, i32, i32
  }
  func.func @transform_1(%arg0: i32, %arg1: i32) -> (i32, i32) {
    %c0_i32 = arith.constant 0 : i32
    %c0_i32_0 = arith.constant 0 : i32
    %c0_i32_1 = arith.constant 0 : i32
    return %c0_i32, %c0_i32_0 : i32, i32
  }
}

</mosaic_0001>

<bundles_post_ra>
// kernel: tpu_custom_call.1
= control target key start
LH: loop header
LB: loop body
LE: loop exit
PB: predicated region body
PF: predicated region fallthrough
CT: control target
= control target key end

     0   :  { %6 = vsyncpa [#allocation4], 0  ;;  %s728_s0 = inlined_call_operand.hbm [shape: f32[2,4,256], index: 0, kind: input, shape index: {}]   ;;  %s729_s1 = inlined_call_operand.hbm [shape: f32[1,1], index: 1, kind: output, shape index: {}]  }
   0x1   :  { %8 = vsyncpa [#allocation4 + $0x1], 0 }
   0x2   :  { %9 = vsyncpa [#allocation5], 0  ;;  %s568_s6 = smov 0   ;;  %s570_s7 = smov 0  }
   0x3   :  { %s572_s8 = smov 0   ;;  %s574_s9 = smov 0  }
   0x4   :  { %s576_s10 = smov 0   ;;  %s578_s11 = smov 0  }
   0x5 LB: > { %s348_s12 = sadd.s32 4294967295, %s552_s11   ;;  %s27_s13 = sadd.s32 1, %s548_s10  ;;  %s552_s11 = sphi %s578_s11, %s15_s11   ;;  %s548_s10 = sphi %s576_s10, %s740_s10   ;;  %s544_s9 = sphi %s574_s9, %s739_s9   ;;  %s540_s8 = sphi %s572_s8, %s738_s8   ;;  %s536_s7 = sphi %s570_s7, %s737_s7   ;;  %s532_s6 = sphi %s568_s6, %s736_s6  }
   0x6   : > { %p29_p0 = scmp.ge.s32.totalorder %s27_s13, 2  ;;  %s36_s14 = sadd.s32 1, %s540_s8 }
   0x7   : > { %p43_p1 = scmp.ne.s32.totalorder %s540_s8, %s536_s7  ;;  %p44_p2 = scmp.eq.s32.totalorder %s552_s11, 0 }
   0x8   : > { %s742_s13 = smov (%p29_p0, %s27_s13), 0  ;;  %p49_p4 = scmp.ne.s32.totalorder %s536_s7, %s532_s6 }
   0x9   : > { %p604_p3 = por %p44_p2, %p43_p1  ;;  %s31_s16 = ssub.s32 %s548_s10, %s742_s13 }
   0xa   : > { %p50_p5 = scmp.eq.s32.totalorder %s348_s12, 0  ;;  %p34_p6 = scmp.eq.s32.totalorder %s31_s16, 0 }
   0xb   : > { %p377_p8 = scmp.lt.s32.totalorder %s552_s11, 2  ;;  %s94_s19 = sand.u32 1, %s540_s8  }
   0xc   : > { %p613_p7 = por %p50_p5, %p49_p4  ;;  %s362_s20 = sshll.u32 %s548_s10, 7 }
   0xd   : > { %s619_s18 = scalar_select %p34_p6, %s540_s8, %s36_s14  }
   0xe   : > { %s351_s21 = sshll.u32 %s94_s19, 3  ;;  %s626_s24 = scalar_lea.hbm %s728_s0, %s362_s20 }
   0xf   : > { %s98_s25 = scalar_lea.vmem [#allocation3], %s351_s21  ;;  %p630_p9 = pnand %p377_p8, %p604_p3 }
  0x10   : > { %s108_s26 = sshll.u32 %s98_s25, 4  ;;  %s95_s28 = scalar_lea.sflag [#allocation4], %s94_s19  ;;  %s634_s26 = int_to_ptr.vmem [resolvable:$true] %s108_s26 }
  0x11   : > { %s442_s29 = scalar_lea.hbm %s626_s24, 128  ;;  %p444_p13 = pneg %p630_p9 }
  0x12   : > { %p443_p12 = scmp.ne.s32.totalorder %s626_s24, %s442_s29  ;;  %s447_s3 = scalar_lea.hbm %s728_s0, 256 }
  0x13   : > { %p448_p2 = scmp.lt.u32.totalorder %s626_s24, %s728_s0  ;;  %p449_p3 = scmp.lt.u32.totalorder %s447_s3, %s442_s29 }
  0x14   : > { %p445_p0 = pnand %p444_p13, %p443_p12  ;;  %p451_p5 = scmp.lt.u32.totalorder %s442_s29, %s626_s24 }
  0x15   : > { %p450_p4 = por %p449_p3, %p448_p2 }
  0x16   : > { %p446_p1 = pneg %p445_p0 }
  0x17   : > { %p452_p6 = por %p451_p5, %p450_p4 }
  0x19   : > { %p453_p8 = pnand %p452_p6, %p446_p1 }
  0x1b   : > { %456 = shalt.err (!%p453_p8)
}
  0x1c   : > { %s457_s6 = scalar_lea.vmem %s634_s26, 128  ;;  %s554_s14 = smov [#allocation3]  }
  0x1d   : > { %p458_p12 = scmp.ne.s32.totalorder %s634_s26, %s457_s6  ;;  %s462_s15 = sshll.u32 %s554_s14, 4  ;;  %s463_s15 = int_to_ptr.vmem [resolvable:$false] %s462_s15 }
  0x1e   : > { %s464_s16 = scalar_lea.vmem %s463_s15, 256  ;;  %p465_p11 = scmp.lt.s32.totalorder %s634_s26, %s463_s15 }
  0x1f   : > { %p460_p0 = pnand %p458_p12, %p444_p13  ;;  %p466_p2 = scmp.lt.s32.totalorder %s464_s16, %s457_s6 }
  0x21   : > { %p461_p10 = pneg %p460_p0  ;;  %p467_p3 = por %p466_p2, %p465_p11 }
  0x23   : > { %p468_p4 = pnand %p467_p3, %p461_p10 }
  0x25   : > { %471 = shalt.err (!%p468_p4)
}
  0x26   : > { %376 = dma.hbm_to_vmem [thread:$0]  (!%p630_p9), %s626_s24, 128, %s634_s26, %s95_s28  }
  0x27   : > { %p733_p1 = scmp.lt.s32.totalorder %s552_s11, 3  ;;  %p734_p5 = scmp.ge.s32.totalorder %s552_s11, 1 }
  0x29   : > { %p114_p13 = pnand %p734_p5, %p733_p1 }
  0x2a   : > { %s119_s19 = sand.u32 (!%p114_p13), 1, %s536_s7  }
  0x2b   : > { %117 = sbr.rel (%p114_p13) target bundleno = 376 (0x178), region = 24  ;;  %s355_s20 = sshll.u32 (!%p114_p13), %s119_s19, 3 }
  0x2c   : > { %s120_s21 = scalar_lea.sflag (!%p114_p13), [#allocation4], %s119_s19  ;;  %s123_s22 = scalar_lea.vmem (!%p114_p13), [#allocation3], %s355_s20 }
  0x32   : > { %523 = dma.done.wait (%p613_p7), %s120_s21, 128  }
  0x33   : > { %525 = vsyncadd (%p613_p7), %s120_s21, 4294967168  ;;  %p138_p10 = scmp.eq.s32.totalorder %s544_s9, 0 }
  0x34   : > { %v144_v0 = vlaneseq (%p138_p10)  ;;  %v555_v1 = vmov (%p138_p10), 0.0  }
  0x35   : > { %143 = sbr.rel (!%p138_p10) target bundleno = 60 (0x3c), region = 32 }
  0x36   : > { %vm146_vm0 = vcmp.lt.s32.totalorder (%p138_p10), %v144_v0, 256 }
  0x37   : > { %148 = vst.msk [vmem:[#allocation2] sm:$0x3] (%p138_p10), %vm146_vm0, %v555_v1 }
  0x3c PF: > { %v149_v2 = vld [vmem:[%s123_s22] sm:$0xff]  ;;  %vm153_vm1 = vcmask 1043456   ;;  %p245_p9 = scmp.eq.s32.totalorder %s544_s9, 1  ;;  %v556_v52 = vmov 1966171168   ;;  %v227_v54 = vlaneseq }
  0x3d   : > { %v151_v3 = vcombine.high %v149_v2, %v149_v2  ;;  %v154_v4 = vsel %vm153_vm1, %v149_v2, -inf  ;;  %v225_v53 = vunpack.c.l.s4 %v556_v52  ;;  %vm262_vm3 = vcmask (%p245_p9), 1040384  }
  0x3e   : > { %v155_v5 = vrot.slane %v154_v4, 4  ;;  %v228_v62 = vshrl.u32 %v227_v54, 7  ;;  %vm242_vm2 = vcmp.lt.s32.totalorder %v227_v54, 256  ;;  %vm277_vm4 = vcmask (%p245_p9), 0  }
  0x3f   : > { %v161_v6 = vsel %vm153_vm1, %v151_v3, -inf  ;;  %v226_v61 = vunpack.c.0.s8 %v225_v53 }
  0x40   : > { %v156_v7 = vmax.f32 %v154_v4, %v155_v5  ;;  %v162_v8 = vrot.slane %v161_v6, 4 }
  0x41   : > { %v229_v4 = vsub.s32 %v226_v61, %v228_v62 }
  0x42   : > { %v157_v9 = vrot.slane %v156_v7, 2  ;;  %v163_v10 = vmax.f32 %v161_v6, %v162_v8 }
  0x44   : > { %v158_v11 = vmax.f32 %v156_v7, %v157_v9  ;;  %v164_v12 = vrot.slane %v163_v10, 2  ;;  %v220_v7 = vld [vmem:[#allocation2] sm:$0x3] }
  0x46   : > { %v159_v13 = vrot.slane %v158_v11, 1  ;;  %v165_v14 = vmax.f32 %v163_v10, %v164_v12  ;;  %v258_v12 = vsub.s32 (%p245_p9), 1, %v228_v62 }
  0x48   : > { %v160_v15 = vmax.f32 %v158_v11, %v159_v13  ;;  %v166_v16 = vrot.slane %v165_v14, 1  ;;  %v254_v11 = vsub.s32 (%p245_p9), 0, %v228_v62 }
  0x4a   : > { %v167_v17 = vmax.f32 %v165_v14, %v166_v16 }
  0x4c   : > { %v170_v18 = vcombine.low %v160_v15, %v167_v17 }
  0x4e   : > { %v172_v19 = vsub.f32 %v149_v2, %v170_v18 }
  0x50   : > { %v173_v20 = vmul.f32 1.442695, %v172_v19 }
  0x52   : > { %432 = vpow2.f32 %v173_v20 }
  0x5c   : > { %v433_v21 = vpop.eup %432 }
  0x5d   : > { %v176_v22 = vcombine.high %v433_v21, %v433_v21  ;;  %v178_v23 = vsel %vm153_vm1, %v433_v21, 0.0  ;;  %v192_v24 = vmul.f32 %v433_v21, %v172_v19 }
  0x5e   : > { %v179_v25 = vrot.slane %v178_v23, 4 }
  0x5f   : > { %v185_v26 = vsel %vm153_vm1, %v176_v22, 0.0  ;;  %v194_v27 = vcombine.high %v192_v24, %v192_v24  ;;  %v196_v28 = vsel %vm153_vm1, %v192_v24, 0.0 }
  0x60   : > { %v180_v29 = vadd.f32 %v179_v25, %v178_v23  ;;  %v186_v30 = vrot.slane %v185_v26, 4  ;;  %v197_v31 = vrot.slane %v196_v28, 4 }
  0x61   : > { %v203_v32 = vsel %vm153_vm1, %v194_v27, 0.0 }
  0x62   : > { %v181_v33 = vrot.slane %v180_v29, 2  ;;  %v187_v34 = vadd.f32 %v186_v30, %v185_v26  ;;  %v198_v35 = vadd.f32 %v197_v31, %v196_v28  ;;  %v204_v36 = vrot.slane %v203_v32, 4 }
  0x64   : > { %v182_v37 = vadd.f32 %v181_v33, %v180_v29  ;;  %v188_v38 = vrot.slane %v187_v34, 2  ;;  %v205_v39 = vadd.f32 %v204_v36, %v203_v32  ;;  %v199_v40 = vrot.slane %v198_v35, 2 }
  0x66   : > { %v183_v41 = vrot.slane %v182_v37, 1  ;;  %v189_v42 = vadd.f32 %v188_v38, %v187_v34  ;;  %v206_v43 = vrot.slane %v205_v39, 2  ;;  %v200_v46 = vadd.f32 %v199_v40, %v198_v35 }
  0x68   : > { %v184_v44 = vadd.f32 %v183_v41, %v182_v37  ;;  %v190_v45 = vrot.slane %v189_v42, 1  ;;  %v207_v48 = vadd.f32 %v206_v43, %v205_v39  ;;  %v201_v49 = vrot.slane %v200_v46, 1 }
  0x6a   : > { %v191_v47 = vadd.f32 %v190_v45, %v189_v42  ;;  %434 = vrcp.f32 %v184_v44  ;;  %v208_v50 = vrot.slane %v207_v48, 1  ;;  %v202_v51 = vadd.f32 %v201_v49, %v200_v46 }
  0x6b   : > { %436 = vlog2.f32 %v184_v44 }
  0x6c   : > { %438 = vrcp.f32 %v191_v47  ;;  %v209_v55 = vadd.f32 %v208_v50, %v207_v48 }
  0x6d   : > { %440 = vlog2.f32 %v191_v47 }
  0x74   : > { %v435_v56 = vpop.eup %434 }
  0x75   : > { %v437_v57 = vpop.eup %436  ;;  %v211_v58 = vmul.f32 %v435_v56, %v202_v51 }
  0x76   : > { %v439_v59 = vpop.eup %438  ;;  %v215_v60 = vmul.f32 0.6931472, %v437_v57 }
  0x77   : > { %v441_v63 = vpop.eup %440  ;;  %v213_v0 = vmul.f32 %v439_v59, %v209_v55 }
  0x78   : > { %v217_v1 = vmul.f32 0.6931472, %v441_v63  ;;  %v218_v2 = vsub.f32 %v211_v58, %v215_v60 }
  0x7a   : > { %v219_v3 = vsub.f32 %v213_v0, %v217_v1 }
  0x7c   : > { %v223_v5 = vcombine.low %v218_v2, %v219_v3 }
  0x7e   : > { %v230_v6 = vrot.slane %v223_v5, %v229_v4  ;;  %249 = sbr.rel (!%p245_p9) target bundleno = 351 (0x15f), region = 36 }
  0x80   : > { %v237_v8 = vrot.slane %v230_v6, %v229_v4 }
  0x82   : > { %v239_v9 = vadd.f32 %v237_v8, %v220_v7 }
  0x84   : > { %244 = vst.msk [vmem:[#allocation2] sm:$0x3] %vm242_vm2, %v239_v9 }
  0x8b   : > { %v250_v10 = vld [vmem:[#allocation2] sm:$0x3] }
  0x8c   : > { %v255_v13 = vrot.slane %v250_v10, %v254_v11  ;;  %v259_v14 = vrot.slane %v250_v10, %v258_v12 }
  0x8e   : > { %v263_v15 = vsel %vm262_vm3, %v255_v13, 0.0  ;;  %v264_v16 = vsel %vm262_vm3, %v259_v14, 0.0 }
  0x8f   : > { %v265_v17 = vadd.f32 %v264_v16, %v263_v15 }
  0x91   : > { %266 = vadd.xlane.f32.xlu0 %v265_v17 }
 0x11e   : > { %v267_v18 = vpop.xlane.xlu0 %266 }
 0x11f   : > { %v268_v19 = vrot.slane %v267_v18, 4 }
 0x121   : > { %v269_v20 = vadd.f32 %v268_v19, %v267_v18 }
 0x123   : > { %v270_v21 = vrot.slane %v269_v20, 2 }
 0x125   : > { %v271_v22 = vadd.f32 %v270_v21, %v269_v20 }
 0x127   : > { %v272_v23 = vrot.slane %v271_v22, 1 }
 0x129   : > { %v273_v24 = vadd.f32 %v272_v23, %v271_v22 }
 0x12b   : > { %365 = vpush %v273_v24 }
 0x15c   : > { %s366_s9 = spop %365 }
 0x15d   : > { %v275_v25 = vstv %s366_s9 }
 0x15e   : > { %278 = vst.msk [vmem:[#allocation6] sm:$0x1] %vm277_vm4, %v275_v25 }
 0x15f PF: > { %p684_p7 = scmp.eq.s32.totalorder %s348_s12, 1  ;;  %s557_s23 = smov [#allocation6]  }
 0x160   : > { %s286_s24 = sshll.u32 %s557_s23, 4  ;;  %s287_s24 = int_to_ptr.vmem [resolvable:$true] %s286_s24 }
 0x161   : > { %s472_s25 = scalar_lea.vmem %s287_s24, 16  ;;  %s478_s26 = scalar_lea.vmem %s287_s24, 32 }
 0x162   : > { %p473_p11 = scmp.ne.s32.totalorder %s287_s24, %s472_s25  ;;  %p479_p12 = scmp.lt.s32.totalorder %s287_s24, %s287_s24 }
 0x163   : > { %p480_p0 = scmp.lt.s32.totalorder %s478_s26, %s472_s25 }
 0x164   : > { %p474_p6 = pnand %p473_p11, %p684_p7 }
 0x165   : > { %p481_p2 = por %p480_p0, %p479_p12 }
 0x166   : > { %p475_p8 = pneg %p474_p6 }
 0x168   : > { %p482_p3 = pnand %p481_p2, %p475_p8 }
 0x16a   : > { %485 = shalt.err (!%p482_p3)
}
 0x16b   : > { %s486_s28 = scalar_lea.hbm %s729_s1, 16 }
 0x16c   : > { %p487_p4 = scmp.ne.s32.totalorder %s729_s1, %s486_s28  ;;  %p492_p13 = scmp.lt.u32.totalorder %s486_s28, %s729_s1 }
 0x16e   : > { %p488_p1 = pnand %p487_p4, %p684_p7 }
 0x170   : > { %p489_p5 = pneg %p488_p1 }
 0x172   : > { %p494_p10 = pnand %p492_p13, %p489_p5 }
 0x174   : > { %497 = shalt.err (!%p494_p10)
}
 0x175   : > { %370 = dma.vmem_to_hbm [thread:$0]  (%p684_p7), %s287_s24, 16, %s729_s1, [#allocation5]  }
 0x176   : > { %527 = dma.done.wait (%p684_p7), [#allocation5], 16  }
 0x177   : > { %529 = vsyncadd (%p684_p7), [#allocation5], 4294967280 }
 0x178 PF: > { %s15_s11 = sadd.s32 1, %s552_s11   ;;  %s736_s6 = smov %s536_s7 }
 0x179   : > { %p12_p9 = scmp.ge.s32.totalorder %s15_s11, 4   ;;  %s737_s7 = smov %s540_s8 }
 0x17a   : > { %s738_s8 = smov %s619_s18  ;;  %s739_s9 = smov %s548_s10 }
 0x17b   : > { %s740_s10 = smov %s742_s13  ;;  %14 = sbr.rel (!%p12_p9) target bundleno = 5 (0x5), region = 69 }
 0x182   :  { %299 = vsyncpa [#allocation4], 1 }
 0x183   :  { %301 = vsyncpa [#allocation4 + $0x1], 1 }
 0x184   :  { %302 = vsyncpa [#allocation5], 1 }
 0x185   :  { %304 = vsyncpa [#allocation5 + $0x1], 1 }

</bundles_post_ra>
